<compile_context>
chip_gen: v7x
topology: tpu7x:2x2x1
jax: 0.10.0
libtpu: 0.0.40
codegen_flags: <defaults>
</compile_context>

<pallas_src>
import functools

import jax
import jax.numpy as jnp
from jax import lax
from jax.experimental import pallas as pl
from jax.experimental.pallas import tpu as pltpu

LANE = 128
SUBLANE = 8
MAX_TILE_ROWS = 2048                    # 2048*128 f32 = 1 MiB per (1, rows) slab
DOUBLE_BUF_BUDGET = 6 * 1024 * 1024     # double-buffered input bytes; safe on v5e


# ---------------- in-kernel helpers ------------------------------------------
def _fold_to_vreg(x):
    # (B_or_1, tile_rows, LANE) -> (SUBLANE, LANE).
    # Batch fold + row-group fold are plain vreg adds (VPU); no cross-lane /
    # cross-sublane reduce inside the hot loop.
    s = jnp.sum(x, axis=0)                               # (tile_rows, LANE)
    return jnp.sum(s.reshape(-1, SUBLANE, LANE), axis=0)  # (SUBLANE, LANE)


def _row_mask(rows, tile_rows):
    # Valid-row mask for a (possibly) ragged last tile.
    rem = rows - pl.program_id(0) * tile_rows
    row_ids = lax.broadcasted_iota(jnp.int32, (1, tile_rows, LANE), 1)
    return row_ids < rem


# ---------------- fused D-phase kernel ---------------------------------------
# Accumulates sum(pred*w), sum(target*w), sum(w^2) across feature-row tiles.
def _d_phase_kernel(p_ref, t_ref, w_ref, sp_ref, st_ref, wsq_ref,
                    *, rows, tile_rows, ragged):
    @pl.when(pl.program_id(0) == 0)
    def _init():
        sp_ref[...] = jnp.zeros_like(sp_ref)
        st_ref[...] = jnp.zeros_like(st_ref)
        wsq_ref[...] = jnp.zeros_like(wsq_ref)

    p = p_ref[...].astype(jnp.float32)    # (B, TR, LANE)
    t = t_ref[...].astype(jnp.float32)
    w = w_ref[...].astype(jnp.float32)    # (1, TR, LANE)
    if ragged:
        valid = _row_mask(rows, tile_rows)
        p = jnp.where(valid, p, 0.0)
        t = jnp.where(valid, t, 0.0)
        w = jnp.where(valid, w, 0.0)

    sp_ref[...] += _fold_to_vreg(p * w)
    st_ref[...] += _fold_to_vreg(t * w)
    wsq_ref[...] += _fold_to_vreg(w * w)


# ---------------- fused G-phase kernel ---------------------------------------
# Accumulates sum(pred*w), sum|pred-target|, sum (pred-target)^2.
def _g_phase_kernel(p_ref, t_ref, w_ref, sp_ref, sa_ref, ss_ref,
                    *, rows, tile_rows, ragged):
    @pl.when(pl.program_id(0) == 0)
    def _init():
        sp_ref[...] = jnp.zeros_like(sp_ref)
        sa_ref[...] = jnp.zeros_like(sa_ref)
        ss_ref[...] = jnp.zeros_like(ss_ref)

    p = p_ref[...].astype(jnp.float32)
    t = t_ref[...].astype(jnp.float32)
    w = w_ref[...].astype(jnp.float32)
    if ragged:
        valid = _row_mask(rows, tile_rows)
        p = jnp.where(valid, p, 0.0)
        t = jnp.where(valid, t, 0.0)
        w = jnp.where(valid, w, 0.0)

    d = p - t
    sp_ref[...] += _fold_to_vreg(p * w)
    sa_ref[...] += _fold_to_vreg(jnp.abs(d))
    ss_ref[...] += _fold_to_vreg(d * d)


# ---------------- host-side packing / launch helpers --------------------------
def _round_up(x, m):
    return ((x + m - 1) // m) * m


def _pack(x, batch):
    # (batch, ...) -> (batch, rows, 128) lane-dense view.
    # Contiguous reshape is free; pad (one copy) only if n_feat % 1024 != 0 so
    # that rows is always a multiple of 8.  No dtype cast here.
    n = x.size // batch
    padded = _round_up(n, SUBLANE * LANE)
    if padded != n:
        x = jnp.pad(x.reshape(batch, n), ((0, 0), (0, padded - n)))
    return x.reshape(batch, padded // LANE, LANE)


def _plan_tile_rows(rows, bytes_per_row):
    # Size the tile from the double-buffered-input VMEM budget, cap it, then
    # balance tiles so the last one is (nearly) full.
    cap = (DOUBLE_BUF_BUDGET // (2 * bytes_per_row)) // SUBLANE * SUBLANE
    cap = max(SUBLANE, min(cap, MAX_TILE_ROWS, rows))
    num_tiles = pl.cdiv(rows, cap)
    tile_rows = _round_up(pl.cdiv(rows, num_tiles), SUBLANE)
    return min(tile_rows, rows)


def _fused_reduce(kernel_fn, pred3, tgt3, w3, flops):
    B, rows, _ = pred3.shape
    bytes_per_row = LANE * (B * (pred3.dtype.itemsize + tgt3.dtype.itemsize)
                            + w3.dtype.itemsize)
    tile_rows = _plan_tile_rows(rows, bytes_per_row)
    num_tiles = pl.cdiv(rows, tile_rows)
    ragged = (rows % tile_rows) != 0   # compile the row mask only when needed

    kernel = functools.partial(kernel_fn, rows=rows, tile_rows=tile_rows,
                               ragged=ragged)

    def in_map(i):
        return (0, i, 0)

    acc_spec = pl.BlockSpec((SUBLANE, LANE), lambda i: (0, 0))
    bytes_accessed = rows * bytes_per_row + 3 * SUBLANE * LANE * 4

    outs = pl.pallas_call(
        kernel,
        out_shape=tuple(
            jax.ShapeDtypeStruct((SUBLANE, LANE), jnp.float32)
            for _ in range(3)),
        grid_spec=pltpu.PrefetchScalarGridSpec(
            num_scalar_prefetch=0,
            grid=(num_tiles,),
            in_specs=[pl.BlockSpec((B, tile_rows, LANE), in_map),
                      pl.BlockSpec((B, tile_rows, LANE), in_map),
                      pl.BlockSpec((1, tile_rows, LANE), in_map)],
            out_specs=(acc_spec, acc_spec, acc_spec)),
        compiler_params=pltpu.CompilerParams(
            dimension_semantics=("arbitrary",)),
        cost_estimate=pl.CostEstimate(flops=int(flops), transcendentals=0,
                                      bytes_accessed=int(bytes_accessed)),
    )(pred3, tgt3, w3)

    # Single cross-lane/sublane reduce on the tiny (8, 128) accumulators.
    return tuple(o.sum() for o in outs)


# ---------------- LossGAN module (JAX / Pallas) -------------------------------
class LossGANPallas:
    def __init__(self, epochs=8, perceptual_loss=False):
        self.epochs = epochs
        self.perceptual_loss = perceptual_loss
        # TODO(synk): perceptual_loss path needs a pretrained resnet34; not implemented.

    def forward(self, phase, disc_params, pred, target, epoch_id, alpha=None):
        w, b = disc_params
        B = pred.shape[0]
        n_feat = pred.size // B

        pred3 = _pack(pred, B)
        tgt3 = _pack(target, B)
        w3 = _pack(w.reshape(1, -1), 1)
        rows = pred3.shape[1]

        if phase == 'D':
            flops = rows * LANE * (4 * B + 2)
            s_pred, s_tgt, w_sq = _fused_reduce(
                _d_phase_kernel, pred3, tgt3, w3, flops)
            mean_d_pred = s_pred / B + b
            mean_d_tgt = s_tgt / B + b
            adv_D_loss = -mean_d_tgt + mean_d_pred
            # TODO(synk): torch.autograd.grad through an arbitrary Discriminator has
            # no direct Pallas equivalent; for the linear stand-in D(x)=x@w+b the
            # gradient of D w.r.t. the interpolated input is w for every sample, so
            # alpha*pred+(1-alpha)*target never needs materializing and
            # torch.norm(dxdD, p=2) over the whole (B, N) tensor equals sqrt(B)*||w||.
            frob = jnp.sqrt(jnp.float32(B) * w_sq)
            gp_loss = (frob - 1.0) ** 2        # mean over a scalar is identity
            return adv_D_loss, gp_loss, None
        else:
            flops = rows * LANE * (7 * B)
            s_pred, sum_abs, sum_sq = _fused_reduce(
                _g_phase_kernel, pred3, tgt3, w3, flops)
            adv_G_loss = -(s_pred / B + b)
            n = jnp.float32(B * n_feat)
            # Python-level branch (matches the PyTorch module); requires a
            # concrete epoch_id -- do not pass a traced value here.
            if epoch_id < self.epochs // 4:
                pixel_loss = sum_abs / n       # L1Loss (mean)
            else:
                pixel_loss = sum_sq / n        # MSELoss (mean)
            perceptual_loss = 0
            return adv_G_loss, pixel_loss, perceptual_loss


if __name__ == "__main__":
    B, C, H, W = 2, 4, 16, 16
    N = C * H * W

    key = jax.random.PRNGKey(0)
    k_pred, k_tgt, k_w, k_b, k_alpha = jax.random.split(key, 5)

    pred = jax.random.normal(k_pred, (B, C, H, W), dtype=jnp.float32)
    target = jax.random.normal(k_tgt, (B, C, H, W), dtype=jnp.float32)

    # Synthetic deterministic Discriminator parameters: D(x) = flatten(x) @ w + b
    disc_w = jax.random.normal(k_w, (N, 1), dtype=jnp.float32) * 0.02
    disc_b = jax.random.normal(k_b, (), dtype=jnp.float32) * 0.01
    disc_params = (disc_w, disc_b)

    alpha = jax.random.uniform(k_alpha, (B, 1, 1, 1), dtype=jnp.float32)

    loss_mod = LossGANPallas(epochs=8, perceptual_loss=False)

    # Discriminator phase
    adv_D, gp, _ = loss_mod.forward('D', disc_params, pred, target,
                                    epoch_id=0, alpha=alpha)
    # Generator phase, early epoch (L1) and late epoch (MSE)
    adv_G_l1, pix_l1, perc = loss_mod.forward('G', disc_params, pred, target,
                                              epoch_id=1)
    adv_G_mse, pix_mse, _ = loss_mod.forward('G', disc_params, pred, target,
                                             epoch_id=5)

    for v in (adv_D, gp, adv_G_l1, pix_l1, adv_G_mse, pix_mse):
        jax.block_until_ready(v)

    # --- lightweight correctness check against a pure-jnp reference ---------
    def d_scores(x):
        return x.reshape(B, -1) @ disc_w + disc_b

    ref_adv_D = -jnp.mean(d_scores(target)) + jnp.mean(d_scores(pred))
    ref_frob = jnp.sqrt(jnp.float32(B) * jnp.sum(disc_w ** 2))
    ref_gp = (ref_frob - 1.0) ** 2
    ref_adv_G = -jnp.mean(d_scores(pred))
    diff = pred - target
    ref_l1 = jnp.mean(jnp.abs(diff))
    ref_mse = jnp.mean(diff ** 2)
    for got, want in ((adv_D, ref_adv_D), (gp, ref_gp),
                      (adv_G_l1, ref_adv_G), (pix_l1, ref_l1),
                      (adv_G_mse, ref_adv_G), (pix_mse, ref_mse)):
        assert jnp.allclose(got, want, rtol=1e-3, atol=1e-5), (got, want)

    print("KERNEL_OK")
</pallas_src>

<mosaic_0001>
module attributes {stable_mosaic.version = 11 : i64} {
  func.func @_d_phase_kernel(%arg0: i32, %arg1: memref<2x8x128xf32, #tpu.memory_space<vmem>>, %arg2: memref<2x8x128xf32, #tpu.memory_space<vmem>>, %arg3: memref<1x8x128xf32, #tpu.memory_space<vmem>>, %arg4: memref<8x128xf32, #tpu.memory_space<vmem>>, %arg5: memref<8x128xf32, #tpu.memory_space<vmem>>, %arg6: memref<8x128xf32, #tpu.memory_space<vmem>>) attributes {dimension_semantics = [#tpu.dimension_semantics<arbitrary>], iteration_bounds = array<i64: 1>, scalar_prefetch = 0 : i64, scratch_operands = 0 : i64, tpu.core_type = #tpu.core_type<tc>, window_params = [{transform_indices = @transform_0, window_bounds = array<i64: 2, 8, 128>}, {transform_indices = @transform_1, window_bounds = array<i64: 2, 8, 128>}, {transform_indices = @transform_2, window_bounds = array<i64: 1, 8, 128>}, {pipeline_mode = #tpu.pipeline_mode<synchronous>, transform_indices = @transform_3, window_bounds = array<i64: 8, 128>}, {pipeline_mode = #tpu.pipeline_mode<synchronous>, transform_indices = @transform_4, window_bounds = array<i64: 8, 128>}, {pipeline_mode = #tpu.pipeline_mode<synchronous>, transform_indices = @transform_5, window_bounds = array<i64: 8, 128>}]} {
    %c0_i32 = arith.constant 0 : i32
    %0 = arith.cmpi eq, %arg0, %c0_i32 : i32
    %1 = arith.extui %0 : i1 to i32
    %c0_i32_0 = arith.constant 0 : i32
    %2 = arith.cmpi ne, %1, %c0_i32_0 : i32
    scf.if %2 {
      %cst_26 = arith.constant 0.000000e+00 : f32
      %29 = vector.broadcast %cst_26 : f32 to vector<8x128xf32>
      %c0_27 = arith.constant 0 : index
      %c0_28 = arith.constant 0 : index
      %30 = vector.load %arg4[%c0_27, %c0_28] : memref<8x128xf32, #tpu.memory_space<vmem>>, vector<8x128xf32>
      tpu.vector_store %arg4[%c0_27, %c0_28], %29 {strides = array<i32>} : memref<8x128xf32, #tpu.memory_space<vmem>>, vector<8x128xf32>,
      %cst_29 = arith.constant 0.000000e+00 : f32
      %31 = vector.broadcast %cst_29 : f32 to vector<8x128xf32>
      %c0_30 = arith.constant 0 : index
      %c0_31 = arith.constant 0 : index
      %32 = vector.load %arg5[%c0_30, %c0_31] : memref<8x128xf32, #tpu.memory_space<vmem>>, vector<8x128xf32>
      tpu.vector_store %arg5[%c0_30, %c0_31], %31 {strides = array<i32>} : memref<8x128xf32, #tpu.memory_space<vmem>>, vector<8x128xf32>,
      %cst_32 = arith.constant 0.000000e+00 : f32
      %33 = vector.broadcast %cst_32 : f32 to vector<8x128xf32>
      %c0_33 = arith.constant 0 : index
      %c0_34 = arith.constant 0 : index
      %34 = vector.load %arg6[%c0_33, %c0_34] : memref<8x128xf32, #tpu.memory_space<vmem>>, vector<8x128xf32>
      tpu.vector_store %arg6[%c0_33, %c0_34], %33 {strides = array<i32>} : memref<8x128xf32, #tpu.memory_space<vmem>>, vector<8x128xf32>,
    } else {
    }
    %c0 = arith.constant 0 : index
    %c0_1 = arith.constant 0 : index
    %c0_2 = arith.constant 0 : index
    %3 = vector.load %arg1[%c0, %c0_1, %c0_2] : memref<2x8x128xf32, #tpu.memory_space<vmem>>, vector<2x8x128xf32>
    %c0_3 = arith.constant 0 : index
    %c0_4 = arith.constant 0 : index
    %c0_5 = arith.constant 0 : index
    %4 = vector.load %arg2[%c0_3, %c0_4, %c0_5] : memref<2x8x128xf32, #tpu.memory_space<vmem>>, vector<2x8x128xf32>
    %c0_6 = arith.constant 0 : index
    %c0_7 = arith.constant 0 : index
    %c0_8 = arith.constant 0 : index
    %5 = vector.load %arg3[%c0_6, %c0_7, %c0_8] : memref<1x8x128xf32, #tpu.memory_space<vmem>>, vector<1x8x128xf32>
    %c0_9 = arith.constant 0 : index
    %c0_10 = arith.constant 0 : index
    %6 = vector.load %arg4[%c0_9, %c0_10] : memref<8x128xf32, #tpu.memory_space<vmem>>, vector<8x128xf32>
    %7 = vector.broadcast %5 : vector<1x8x128xf32> to vector<2x8x128xf32>
    %8 = arith.mulf %3, %7 : vector<2x8x128xf32>
    %cst = arith.constant dense<0.000000e+00> : vector<8x128xf32>
    %9 = vector.multi_reduction <add>, %8, %cst [0] : vector<2x8x128xf32> to vector<8x128xf32>
    %10 = vector.shape_cast %9 : vector<8x128xf32> to vector<1x8x128xf32>
    %cst_11 = arith.constant dense<0.000000e+00> : vector<8x128xf32>
    %11 = vector.multi_reduction <add>, %10, %cst_11 [0] : vector<1x8x128xf32> to vector<8x128xf32>
    %12 = arith.addf %6, %11 : vector<8x128xf32>
    %c0_12 = arith.constant 0 : index
    %c0_13 = arith.constant 0 : index
    %13 = vector.load %arg4[%c0_12, %c0_13] : memref<8x128xf32, #tpu.memory_space<vmem>>, vector<8x128xf32>
    tpu.vector_store %arg4[%c0_12, %c0_13], %12 {strides = array<i32>} : memref<8x128xf32, #tpu.memory_space<vmem>>, vector<8x128xf32>,
    %c0_14 = arith.constant 0 : index
    %c0_15 = arith.constant 0 : index
    %14 = vector.load %arg5[%c0_14, %c0_15] : memref<8x128xf32, #tpu.memory_space<vmem>>, vector<8x128xf32>
    %15 = vector.broadcast %5 : vector<1x8x128xf32> to vector<2x8x128xf32>
    %16 = arith.mulf %4, %15 : vector<2x8x128xf32>
    %cst_16 = arith.constant dense<0.000000e+00> : vector<8x128xf32>
    %17 = vector.multi_reduction <add>, %16, %cst_16 [0] : vector<2x8x128xf32> to vector<8x128xf32>
    %18 = vector.shape_cast %17 : vector<8x128xf32> to vector<1x8x128xf32>
    %cst_17 = arith.constant dense<0.000000e+00> : vector<8x128xf32>
    %19 = vector.multi_reduction <add>, %18, %cst_17 [0] : vector<1x8x128xf32> to vector<8x128xf32>
    %20 = arith.addf %14, %19 : vector<8x128xf32>
    %c0_18 = arith.constant 0 : index
    %c0_19 = arith.constant 0 : index
    %21 = vector.load %arg5[%c0_18, %c0_19] : memref<8x128xf32, #tpu.memory_space<vmem>>, vector<8x128xf32>
    tpu.vector_store %arg5[%c0_18, %c0_19], %20 {strides = array<i32>} : memref<8x128xf32, #tpu.memory_space<vmem>>, vector<8x128xf32>,
    %c0_20 = arith.constant 0 : index
    %c0_21 = arith.constant 0 : index
    %22 = vector.load %arg6[%c0_20, %c0_21] : memref<8x128xf32, #tpu.memory_space<vmem>>, vector<8x128xf32>
    %23 = arith.mulf %5, %5 : vector<1x8x128xf32>
    %cst_22 = arith.constant dense<0.000000e+00> : vector<8x128xf32>
    %24 = vector.multi_reduction <add>, %23, %cst_22 [0] : vector<1x8x128xf32> to vector<8x128xf32>
    %25 = vector.shape_cast %24 : vector<8x128xf32> to vector<1x8x128xf32>
    %cst_23 = arith.constant dense<0.000000e+00> : vector<8x128xf32>
    %26 = vector.multi_reduction <add>, %25, %cst_23 [0] : vector<1x8x128xf32> to vector<8x128xf32>
    %27 = arith.addf %22, %26 : vector<8x128xf32>
    %c0_24 = arith.constant 0 : index
    %c0_25 = arith.constant 0 : index
    %28 = vector.load %arg6[%c0_24, %c0_25] : memref<8x128xf32, #tpu.memory_space<vmem>>, vector<8x128xf32>
    tpu.vector_store %arg6[%c0_24, %c0_25], %27 {strides = array<i32>} : memref<8x128xf32, #tpu.memory_space<vmem>>, vector<8x128xf32>,
    return
  }
  func.func @transform_0(%arg0: i32) -> (i32, i32, i32) {
    %c0_i32 = arith.constant 0 : i32
    %c0_i32_0 = arith.constant 0 : i32
    %c0_i32_1 = arith.constant 0 : i32
    return %c0_i32, %arg0, %c0_i32_0 : i32, i32, i32
  }
  func.func @transform_1(%arg0: i32) -> (i32, i32, i32) {
    %c0_i32 = arith.constant 0 : i32
    %c0_i32_0 = arith.constant 0 : i32
    %c0_i32_1 = arith.constant 0 : i32
    return %c0_i32, %arg0, %c0_i32_0 : i32, i32, i32
  }
  func.func @transform_2(%arg0: i32) -> (i32, i32, i32) {
    %c0_i32 = arith.constant 0 : i32
    %c0_i32_0 = arith.constant 0 : i32
    %c0_i32_1 = arith.constant 0 : i32
    return %c0_i32, %arg0, %c0_i32_0 : i32, i32, i32
  }
  func.func @transform_3(%arg0: i32) -> (i32, i32) {
    %c0_i32 = arith.constant 0 : i32
    %c0_i32_0 = arith.constant 0 : i32
    %c0_i32_1 = arith.constant 0 : i32
    return %c0_i32, %c0_i32_0 : i32, i32
  }
  func.func @transform_4(%arg0: i32) -> (i32, i32) {
    %c0_i32 = arith.constant 0 : i32
    %c0_i32_0 = arith.constant 0 : i32
    %c0_i32_1 = arith.constant 0 : i32
    return %c0_i32, %c0_i32_0 : i32, i32
  }
  func.func @transform_5(%arg0: i32) -> (i32, i32) {
    %c0_i32 = arith.constant 0 : i32
    %c0_i32_0 = arith.constant 0 : i32
    %c0_i32_1 = arith.constant 0 : i32
    return %c0_i32, %c0_i32_0 : i32, i32
  }
}

</mosaic_0001>

<bundles_post_ra>
// kernel: tpu_custom_call.1
= control target key start
LH: loop header
LB: loop body
LE: loop exit
PB: predicated region body
PF: predicated region fallthrough
CT: control target
= control target key end

     0   :  { %11 = vsyncpa [#allocation3], 0  ;;  %s413_s0 = inlined_call_operand.hbm [shape: f32[2,8,128], index: 0, kind: input, shape index: {}]   ;;  %s414_s1 = inlined_call_operand.hbm [shape: f32[2,8,128], index: 1, kind: input, shape index: {}]   ;;  %s415_s2 = inlined_call_operand.hbm [shape: f32[1,8,128], index: 2, kind: input, shape index: {}]   ;;  %s416_s3 = inlined_call_operand.hbm [shape: f32[8,128], index: 3, kind: output, shape index: {0}]   ;;  %s417_s4 = inlined_call_operand.hbm [shape: f32[8,128], index: 4, kind: output, shape index: {1}]   ;;  %s418_s5 = inlined_call_operand.hbm [shape: f32[8,128], index: 5, kind: output, shape index: {2}]  }
   0x1   :  { %12 = vsyncpa [#allocation6], 0 }
   0x2   :  { %13 = vsyncpa [#allocation4], 0 }
   0x3   :  { %14 = vsyncpa [#allocation10], 0  ;;  %s282_s18 = smov [#allocation5]   ;;  %s283_s20 = smov [#allocation2]  }
   0x4   :  { %s32_s19 = sshll.u32 %s282_s18, 4  ;;  %s20_s21 = sshll.u32 %s283_s20, 4  ;;  %s33_s19 = int_to_ptr.vmem [resolvable:$true] %s32_s19  ;;  %s320_s21 = int_to_ptr.vmem [resolvable:$true] %s20_s21 }
   0x5   :  { %s142_s24 = scalar_lea.hbm %s414_s1, 256 }
   0x6   :  { %p143_p0 = scmp.ne.s32.totalorder %s414_s1, %s142_s24  ;;  %p146_p1 = scmp.lt.u32.totalorder %s142_s24, %s414_s1 }
   0x8   :  { %p148_p2 = pnand %p146_p1, %p143_p0 }
   0xa   :  { %151 = shalt.err (!%p148_p2)
}
   0xb   :  { %s152_s29 = scalar_lea.vmem %s33_s19, 256  ;;  %p157_p4 = scmp.lt.s32.totalorder %s33_s19, %s33_s19 }
   0xc   :  { %p153_p3 = scmp.ne.s32.totalorder %s33_s19, %s152_s29  ;;  %p158_p5 = scmp.lt.s32.totalorder %s152_s29, %s152_s29 }
   0xe   :  { %p159_p6 = por %p158_p5, %p157_p4 }
  0x10   :  { %p160_p7 = pnand %p159_p6, %p153_p3 }
  0x12   :  { %163 = shalt.err (!%p160_p7)
}
  0x13   :  { %s284_s30 = smov 128   ;;  %s285_s6 = smov 8  }
  0x14   :  { %38 = dma.hbm_to_vmem [thread:$0]  %s414_s1, 256, %s33_s19, [#allocation6], %s284_s30, %s284_s30, %s285_s6  }
  0x15   :  { %s164_s11 = scalar_lea.hbm %s413_s0, 256 }
  0x16   :  { %p165_p8 = scmp.ne.s32.totalorder %s413_s0, %s164_s11  ;;  %p168_p9 = scmp.lt.u32.totalorder %s164_s11, %s413_s0 }
  0x18   :  { %p170_p10 = pnand %p168_p9, %p165_p8 }
  0x1a   :  { %173 = shalt.err (!%p170_p10)
}
  0x1b   :  { %s174_s16 = scalar_lea.vmem %s320_s21, 256  ;;  %p179_p12 = scmp.lt.s32.totalorder %s320_s21, %s320_s21 }
  0x1c   :  { %p175_p11 = scmp.ne.s32.totalorder %s320_s21, %s174_s16  ;;  %p180_p13 = scmp.lt.s32.totalorder %s174_s16, %s174_s16 }
  0x1e   :  { %p181_p0 = por %p180_p13, %p179_p12 }
  0x20   :  { %p182_p1 = pnand %p181_p0, %p175_p11 }
  0x22   :  { %185 = shalt.err (!%p182_p1)
}
  0x23   :  { %26 = dma.hbm_to_vmem [thread:$0]  %s413_s0, 256, %s320_s21, [#allocation3], %s284_s30, %s284_s30, %s285_s6  }
  0x24   :  { %s286_s18 = smov [#allocation7]   ;;  %s186_s23 = scalar_lea.hbm %s415_s2, 128 }
  0x25   :  { %s45_s19 = sshll.u32 %s286_s18, 4  ;;  %p187_p2 = scmp.ne.s32.totalorder %s415_s2, %s186_s23  ;;  %s46_s19 = int_to_ptr.vmem [resolvable:$true] %s45_s19 }
  0x26   :  { %p190_p3 = scmp.lt.u32.totalorder %s186_s23, %s415_s2 }
  0x28   :  { %p192_p4 = pnand %p190_p3, %p187_p2 }
  0x2a   :  { %195 = shalt.err (!%p192_p4)
}
  0x2b   :  { %s196_s28 = scalar_lea.vmem %s46_s19, 128  ;;  %p201_p6 = scmp.lt.s32.totalorder %s46_s19, %s46_s19 }
  0x2c   :  { %p197_p5 = scmp.ne.s32.totalorder %s46_s19, %s196_s28  ;;  %p202_p7 = scmp.lt.s32.totalorder %s196_s28, %s196_s28 }
  0x2e   :  { %p203_p8 = por %p202_p7, %p201_p6 }
  0x30   :  { %p204_p9 = pnand %p203_p8, %p197_p5 }
  0x32   :  { %207 = shalt.err (!%p204_p9)
}
  0x33   :  { %48 = dma.hbm_to_vmem [thread:$0]  %s415_s2, 128, %s46_s19, [#allocation6]  }
  0x34   :  { %274 = dma.done.wait [#allocation3], 256  }
  0x35   :  { %275 = vsyncadd [#allocation3], 4294967040 }
  0x36   :  { %276 = dma.done.wait [#allocation6], 384  }
  0x37   :  { %277 = vsyncadd [#allocation6], 4294966912  ;;  %v67_v0 = vld [vmem:[#allocation5] sm:$0xff]  ;;  %v68_v1 = vld [vmem:[#allocation5 + $0x8] sm:$0xff]  ;;  %s287_s29 = smov [#allocation9]   ;;  %s288_s6 = smov [#allocation8]  }
  0x38   :  { %v69_v2 = vld [vmem:[#allocation7] sm:$0xff]  ;;  %v66_v6 = vld [vmem:[#allocation2 + $0x8] sm:$0xff]  ;;  %s106_s30 = sshll.u32 %s287_s29, 4  ;;  %s96_s7 = sshll.u32 %s288_s6, 4  ;;  %s107_s30 = int_to_ptr.vmem [resolvable:$true] %s106_s30  ;;  %s363_s7 = int_to_ptr.vmem [resolvable:$true] %s96_s7 }
  0x39   :  { %v78_v3 = vmul.f32 %v69_v2, %v67_v0  ;;  %v79_v4 = vmul.f32 %v69_v2, %v68_v1  ;;  %v65_v5 = vld [vmem:[#allocation2] sm:$0xff]  ;;  %v85_v7 = vmul.f32 %v69_v2, %v69_v2  ;;  %v72_v9 = vmul.f32 %v69_v2, %v66_v6  ;;  %s289_s2 = smov [#allocation11]   ;;  %s208_s9 = scalar_lea.vmem %s107_s30, 128 }
  0x3a   :  { %v71_v8 = vmul.f32 %v69_v2, %v65_v5  ;;  %s116_s8 = sshll.u32 %s289_s2, 4  ;;  %p209_p10 = scmp.ne.s32.totalorder %s107_s30, %s208_s9  ;;  %s365_s8 = int_to_ptr.vmem [resolvable:$true] %s116_s8 }
  0x3b   :  { %v80_v10 = vadd.f32 %v79_v4, %v78_v3  ;;  %89 = vst [vmem:[#allocation11] sm:$0xff] %v85_v7  ;;  %p213_p11 = scmp.lt.s32.totalorder %s107_s30, %s107_s30  ;;  %p214_p12 = scmp.lt.s32.totalorder %s208_s9, %s208_s9 }
  0x3c   :  { %v73_v11 = vadd.f32 %v72_v9, %v71_v8 }
  0x3d   :  { %83 = vst [vmem:[#allocation9] sm:$0xff] %v80_v10  ;;  %p215_p13 = por %p214_p12, %p213_p11 }
  0x3e   :  { %76 = vst [vmem:[#allocation8] sm:$0xff] %v73_v11 }
  0x3f   :  { %p216_p0 = pnand %p215_p13, %p209_p10 }
  0x41   :  { %219 = shalt.err (!%p216_p0)
}
  0x42   :  { %s220_s12 = scalar_lea.hbm %s417_s4, 128 }
  0x43   :  { %p221_p1 = scmp.ne.s32.totalorder %s417_s4, %s220_s12  ;;  %p224_p2 = scmp.lt.u32.totalorder %s220_s12, %s417_s4 }
  0x45   :  { %p226_p3 = pnand %p224_p2, %p221_p1 }
  0x47   :  { %229 = shalt.err (!%p226_p3)
}
  0x48   :  { %109 = dma.vmem_to_hbm [thread:$0]  %s107_s30, 128, %s417_s4, [#allocation10]  }
  0x49   :  { %s230_s18 = scalar_lea.vmem %s363_s7, 128  ;;  %p235_p5 = scmp.lt.s32.totalorder %s363_s7, %s363_s7 }
  0x4a   :  { %p231_p4 = scmp.ne.s32.totalorder %s363_s7, %s230_s18  ;;  %p236_p6 = scmp.lt.s32.totalorder %s230_s18, %s230_s18 }
  0x4c   :  { %p237_p7 = por %p236_p6, %p235_p5 }
  0x4e   :  { %p238_p8 = pnand %p237_p7, %p231_p4 }
  0x50   :  { %241 = shalt.err (!%p238_p8)
}
  0x51   :  { %s242_s22 = scalar_lea.hbm %s416_s3, 128 }
  0x52   :  { %p243_p9 = scmp.ne.s32.totalorder %s416_s3, %s242_s22  ;;  %p246_p10 = scmp.lt.u32.totalorder %s242_s22, %s416_s3 }
  0x54   :  { %p248_p11 = pnand %p246_p10, %p243_p9 }
  0x56   :  { %251 = shalt.err (!%p248_p11)
}
  0x57   :  { %99 = dma.vmem_to_hbm [thread:$0]  %s363_s7, 128, %s416_s3, [#allocation4]  }
  0x58   :  { %s252_s28 = scalar_lea.vmem %s365_s8, 128  ;;  %p257_p13 = scmp.lt.s32.totalorder %s365_s8, %s365_s8 }
  0x59   :  { %p253_p12 = scmp.ne.s32.totalorder %s365_s8, %s252_s28  ;;  %p258_p0 = scmp.lt.s32.totalorder %s252_s28, %s252_s28 }
  0x5b   :  { %p259_p1 = por %p258_p0, %p257_p13 }
  0x5d   :  { %p260_p2 = pnand %p259_p1, %p253_p12 }
  0x5f   :  { %263 = shalt.err (!%p260_p2)
}
  0x60   :  { %s264_s29 = scalar_lea.hbm %s418_s5, 128 }
  0x61   :  { %p265_p3 = scmp.ne.s32.totalorder %s418_s5, %s264_s29  ;;  %p268_p4 = scmp.lt.u32.totalorder %s264_s29, %s418_s5 }
  0x63   :  { %p270_p5 = pnand %p268_p4, %p265_p3 }
  0x65   :  { %273 = shalt.err (!%p270_p5)
}
  0x66   :  { %119 = dma.vmem_to_hbm [thread:$0]  %s365_s8, 128, %s418_s5, [#allocation10]  }
  0x67   :  { %278 = dma.done.wait [#allocation4], 128  }
  0x68   :  { %279 = vsyncadd [#allocation4], 4294967168 }
  0x69   :  { %280 = dma.done.wait [#allocation10], 256  }
  0x6a   :  { %281 = vsyncadd [#allocation10], 4294967040 }
  0x6b   :  { %129 = vsyncpa [#allocation3], 1 }
  0x6c   :  { %130 = vsyncpa [#allocation6], 1 }
  0x6d   :  { %131 = vsyncpa [#allocation4], 1 }
  0x6e   :  { %132 = vsyncpa [#allocation10], 1 }

</bundles_post_ra>
